<compile_context>
chip_gen: v6e
topology: v6e:2x2x1
jax: 0.10.0
libtpu: 0.0.40
codegen_flags: <defaults>
</compile_context>

<pallas_src>
import functools

import numpy as np
import jax
import jax.numpy as jnp
from jax import lax
from jax.experimental import pallas as pl
from jax.experimental.pallas import tpu as pltpu


def _rgcn_block_kernel(tile_rel_ref, dst_ref, x_ref, w_ref, o_ref):
    """Grid = (node_tiles, edge_tiles); edge axis is the (inner) reduction axis.

    tile_rel_ref : (num_edge_tiles,) SMEM  relation id per edge tile (prefetch)
    dst_ref      : (TE, 1) int32           dst node id per edge (-1 for padding)
    x_ref        : (TE, in_feat)  bf16     gathered src features for this tile
    w_ref        : (in_feat, out_pad) bf16 block-diagonal dense weight of this
                                           tile's relation
    o_ref        : (TN, out_pad) f32       output block, VMEM-resident across
                                           the edge axis
    """
    e = pl.program_id(1)
    edge_tile = x_ref.shape[0]
    node_tile = o_ref.shape[0]

    @pl.when(e == 0)
    def _():
        o_ref[...] = jnp.zeros_like(o_ref)

    # Per-edge block-diagonal message as ONE lane-dense MXU matmul
    # (bf16 x bf16 -> f32 accumulate).
    msg = jnp.dot(x_ref[...], w_ref[...],
                  preferred_element_type=jnp.float32)          # (TE, out_pad)
    msg = msg.astype(jnp.bfloat16)

    # In-kernel 0/1 scatter slice for this (edge tile, node tile) pair.
    # Padded edges have dst = -1 and therefore an all-zero row.
    col = (lax.broadcasted_iota(jnp.int32, (edge_tile, node_tile), 1)
           + pl.program_id(0) * node_tile)
    a = (dst_ref[...] == col).astype(jnp.bfloat16)             # (TE, TN), exact 0/1

    # Scatter-sum over this edge tile: o += A^T @ msg (contract the edge dim).
    o_ref[...] += lax.dot_general(
        a, msg, (((0,), (0,)), ((), ())), preferred_element_type=jnp.float32)


def _group_edges_by_relation(src, dst, etype, num_rels, edge_tile):
    """Host-side glue: sort edges by relation, pad each group to edge_tile.

    Padded edges get dst = -1 so the in-kernel one-hot row is all zero.
    """
    src = np.asarray(src, np.int32)
    dst = np.asarray(dst, np.int32)
    etype = np.asarray(etype, np.int32)
    order = np.argsort(etype, kind="stable")
    src_s, dst_s, et_s = src[order], dst[order], etype[order]

    src_chunks, dst_chunks, tile_rels = [], [], []
    for r in range(num_rels):
        mask = et_s == r
        cnt = int(mask.sum())
        if cnt == 0:
            continue
        pad = (-cnt) % edge_tile
        src_chunks.append(np.concatenate([src_s[mask], np.zeros(pad, np.int32)]))
        dst_chunks.append(np.concatenate([dst_s[mask],
                                          np.full(pad, -1, np.int32)]))
        tile_rels.extend([r] * ((cnt + pad) // edge_tile))

    src_p = np.concatenate(src_chunks).astype(np.int32)
    dst_p = np.concatenate(dst_chunks).astype(np.int32)
    tile_rel = np.asarray(tile_rels, np.int32)
    return src_p, dst_p, tile_rel


def _default_edge_tile():
    # 256 matches the v6e/v7x 256-wide MXU contraction; 128 for v5e.
    try:
        kind = jax.devices()[0].device_kind.lower()
        if "v5" in kind:
            return 128
    except Exception:
        pass
    return 256


def rgcn_block_layer(feat, weight, src, dst, etype, num_nodes, *,
                     num_bases, edge_tile=None, node_tile=None):
    """Pallas RGCNBlockLayer forward.

    feat   : (N, in_feat) float32
    weight : (num_rels, num_bases * submat_in * submat_out) float32
    src, dst, etype : (E,) int32   (concrete / host arrays)
    returns: (N, out_feat) float32
    """
    num_rels = weight.shape[0]
    in_feat = feat.shape[1]
    submat_in = in_feat // num_bases
    submat_out = weight.shape[1] // (num_bases * submat_in)
    out_feat = num_bases * submat_out
    out_pad = max(128, ((out_feat + 127) // 128) * 128)   # lane-dense output

    if np.asarray(src).shape[0] == 0:
        return jnp.zeros((num_nodes, out_feat), feat.dtype)

    if edge_tile is None:
        edge_tile = _default_edge_tile()

    # --- host-side glue: relation-grouped, padded edge list -----------------
    src_p, dst_p, tile_rel = _group_edges_by_relation(
        src, dst, etype, num_rels, edge_tile)
    num_edge_tiles = int(tile_rel.shape[0])

    # --- node tiling ---------------------------------------------------------
    # TODO(synk): on v7x (2 TCs) prefer >=2 node tiles when the graph is large
    # enough, balanced against the per-node-tile re-stream of x_src.
    if node_tile is None:
        node_tile = 2048
    if node_tile >= num_nodes:
        node_tile = num_nodes            # single node tile == full array dim
        n_padded = num_nodes
    else:
        node_tile = max(128, (node_tile // 128) * 128)   # lane-aligned tiles
        n_padded = ((num_nodes + node_tile - 1) // node_tile) * node_tile
    num_node_tiles = n_padded // node_tile

    # --- operand construction ------------------------------------------------
    # Gathered source features, cast to bf16 for the MXU (f32 accumulate).
    x_src = feat[jnp.asarray(src_p)].astype(jnp.bfloat16)        # (E_pad, in_feat)
    dst_col = jnp.asarray(dst_p).reshape(-1, 1)                  # (E_pad, 1) int32

    # Block-diagonal dense per-relation weight (in_feat, out_pad), bf16.
    w4 = weight.reshape(num_rels, num_bases, submat_in, submat_out)
    w_dense = jnp.zeros((num_rels, in_feat, out_pad), jnp.float32)
    for b in range(num_bases):
        w_dense = w_dense.at[:, b * submat_in:(b + 1) * submat_in,
                             b * submat_out:(b + 1) * submat_out].set(w4[:, b])
    w_dense = w_dense.astype(jnp.bfloat16)

    out = pl.pallas_call(
        _rgcn_block_kernel,
        out_shape=jax.ShapeDtypeStruct((n_padded, out_pad), jnp.float32),
        grid_spec=pltpu.PrefetchScalarGridSpec(
            num_scalar_prefetch=1,                   # tile_rel -> SMEM
            grid=(num_node_tiles, num_edge_tiles),   # edge (reduction) axis last
            in_specs=[
                pl.BlockSpec((edge_tile, 1),
                             lambda n, e, tr: (e, 0)),
                pl.BlockSpec((edge_tile, in_feat),
                             lambda n, e, tr: (e, 0)),
                pl.BlockSpec((None, in_feat, out_pad),
                             lambda n, e, tr: (tr[e], 0, 0)),
            ],
            out_specs=pl.BlockSpec((node_tile, out_pad),
                                   lambda n, e, tr: (n, 0)),
        ),
        compiler_params=pltpu.CompilerParams(
            dimension_semantics=("parallel", "arbitrary"),
            vmem_limit_bytes=48 * 1024 * 1024),      # safe on v7x's 64 MiB VMEM
    )(jnp.asarray(tile_rel), dst_col, x_src, w_dense)

    # Mean normalization applied outside the kernel (exact: sums were 0/1-weighted).
    deg = jnp.zeros((num_nodes,), jnp.float32).at[jnp.asarray(dst, jnp.int32)].add(1.0)
    inv_deg = 1.0 / jnp.maximum(deg, 1.0)
    h = out[:num_nodes, :out_feat] * inv_deg[:, None]
    return h.astype(feat.dtype)


def rgcn_block_layer_ref(feat, weight, src, dst, etype, num_nodes, *, num_bases):
    """Pure-JAX f32 reference (mirrors the PyTorch/DGL forward)."""
    E = src.shape[0]
    si = feat.shape[1] // num_bases
    so = weight.shape[1] // (num_bases * si)
    w_e = weight[etype].reshape(E, num_bases, si, so)
    x_e = feat[src].reshape(E, num_bases, si)
    msg = jnp.einsum('ebi,ebio->ebo', x_e, w_e).reshape(E, num_bases * so)
    sums = jnp.zeros((num_nodes, num_bases * so), jnp.float32).at[dst].add(msg)
    deg = jnp.zeros((num_nodes,), jnp.float32).at[dst].add(1.0)
    return sums / jnp.maximum(deg, 1.0)[:, None]


if __name__ == "__main__":
    # Small synthetic graph / layer config.
    num_nodes = 8
    num_edges = 16
    in_feat = 16
    out_feat = 16
    num_rels = 4
    num_bases = 4
    submat_in = in_feat // num_bases
    submat_out = out_feat // num_bases

    key = jax.random.PRNGKey(0)
    k_feat, k_w, k_src, k_dst, k_et = jax.random.split(key, 5)

    feat = jax.random.normal(k_feat, (num_nodes, in_feat), dtype=jnp.float32)

    # Deterministic xavier_uniform init with gain = calculate_gain('relu') = sqrt(2),
    # matching nn.init.xavier_uniform_ on a (num_rels, num_bases*si*so) tensor.
    fan_out, fan_in = num_rels, num_bases * submat_in * submat_out
    gain = jnp.sqrt(2.0)
    bound = gain * jnp.sqrt(6.0 / (fan_in + fan_out))
    weight = jax.random.uniform(
        k_w, (num_rels, num_bases * submat_in * submat_out),
        minval=-bound, maxval=bound, dtype=jnp.float32)

    src = jax.random.randint(k_src, (num_edges,), 0, num_nodes, dtype=jnp.int32)
    dst = jax.random.randint(k_dst, (num_edges,), 0, num_nodes, dtype=jnp.int32)
    etype = jax.random.randint(k_et, (num_edges,), 0, num_rels, dtype=jnp.int32)

    h = rgcn_block_layer(feat, weight, src, dst, etype, num_nodes,
                         num_bases=num_bases)
    h = jax.block_until_ready(h)

    h_ref = rgcn_block_layer_ref(feat, weight, src, dst, etype, num_nodes,
                                 num_bases=num_bases)
    assert h.shape == (num_nodes, out_feat)
    # bf16 MXU operands (f32 accumulation) vs the exact f32 reference.
    assert jnp.allclose(h, h_ref, atol=5e-2, rtol=5e-2), (
        float(jnp.max(jnp.abs(h - h_ref))))

    print("KERNEL_OK")
</pallas_src>

<mosaic_0001>
module attributes {stable_mosaic.version = 11 : i64} {
  func.func @_rgcn_block_kernel(%arg0: i32, %arg1: i32, %arg2: memref<4xi32, #tpu.memory_space<smem>>, %arg3: memref<256x1xi32, #tpu.memory_space<vmem>>, %arg4: memref<256x16xbf16, #tpu.memory_space<vmem>>, %arg5: memref<1x16x128xbf16, #tpu.memory_space<vmem>>, %arg6: memref<8x128xf32, #tpu.memory_space<vmem>>) attributes {dimension_semantics = [#tpu.dimension_semantics<parallel>, #tpu.dimension_semantics<arbitrary>], iteration_bounds = array<i64: 1, 4>, scalar_prefetch = 1 : i64, scratch_operands = 0 : i64, tpu.core_type = #tpu.core_type<tc>, window_params = [{transform_indices = @transform_0, window_bounds = array<i64: 256, 1>}, {transform_indices = @transform_1, window_bounds = array<i64: 256, 16>}, {transform_indices = @transform_2, window_bounds = array<i64: 1, 16, 128>}, {transform_indices = @transform_3, window_bounds = array<i64: 8, 128>}]} {
    %c0_i32 = arith.constant 0 : i32
    %0 = arith.cmpi eq, %arg1, %c0_i32 : i32
    %1 = arith.extui %0 : i1 to i32
    %c0_i32_0 = arith.constant 0 : i32
    %2 = arith.cmpi ne, %1, %c0_i32_0 : i32
    scf.if %2 {
      %cst_12 = arith.constant 0.000000e+00 : f32
      %22 = vector.broadcast %cst_12 : f32 to vector<8x128xf32>
      %c0_13 = arith.constant 0 : index
      %c0_14 = arith.constant 0 : index
      %23 = vector.load %arg6[%c0_13, %c0_14] : memref<8x128xf32, #tpu.memory_space<vmem>>, vector<8x128xf32>
      tpu.vector_store %arg6[%c0_13, %c0_14], %22 {strides = array<i32>} : memref<8x128xf32, #tpu.memory_space<vmem>>, vector<8x128xf32>,
    } else {
    }
    %c0 = arith.constant 0 : index
    %c0_1 = arith.constant 0 : index
    %3 = vector.load %arg4[%c0, %c0_1] : memref<256x16xbf16, #tpu.memory_space<vmem>>, vector<256x16xbf16>
    %c0_2 = arith.constant 0 : index
    %c0_3 = arith.constant 0 : index
    %c0_4 = arith.constant 0 : index
    %4 = vector.load %arg5[%c0_2, %c0_3, %c0_4] : memref<1x16x128xbf16, #tpu.memory_space<vmem>>, vector<1x16x128xbf16>
    %5 = vector.shape_cast %4 : vector<1x16x128xbf16> to vector<16x128xbf16>
    %cst = arith.constant dense<0.000000e+00> : vector<256x128xf32>
    %6 = tpu.matmul %3, %5, %cst {dimension_numbers = #tpu.dot_dimension_numbers<[1], [0], [0], [1], [0, 0, 1, 1], [], []>} : vector<256x16xbf16>, vector<16x128xbf16>, vector<256x128xf32> -> vector<256x128xf32>
    %7 = arith.truncf %6 : vector<256x128xf32> to vector<256x128xbf16>
    %8 = tpu.iota {dimensions = array<i32: 1>} : vector<256x8xi32>
    %c8_i32 = arith.constant 8 : i32
    %9 = arith.muli %arg0, %c8_i32 : i32
    %10 = vector.broadcast %9 : i32 to vector<256x8xi32>
    %11 = arith.addi %8, %10 : vector<256x8xi32>
    %c0_5 = arith.constant 0 : index
    %c0_6 = arith.constant 0 : index
    %12 = vector.load %arg3[%c0_5, %c0_6] : memref<256x1xi32, #tpu.memory_space<vmem>>, vector<256x1xi32>
    %13 = vector.broadcast %12 : vector<256x1xi32> to vector<256x8xi32>
    %14 = arith.cmpi eq, %13, %11 : vector<256x8xi32>
    %15 = arith.extui %14 : vector<256x8xi1> to vector<256x8xi32>
    %16 = arith.sitofp %15 : vector<256x8xi32> to vector<256x8xf32>
    %17 = arith.truncf %16 : vector<256x8xf32> to vector<256x8xbf16>
    %c0_7 = arith.constant 0 : index
    %c0_8 = arith.constant 0 : index
    %18 = vector.load %arg6[%c0_7, %c0_8] : memref<8x128xf32, #tpu.memory_space<vmem>>, vector<8x128xf32>
    %cst_9 = arith.constant dense<0.000000e+00> : vector<8x128xf32>
    %19 = tpu.matmul %17, %7, %cst_9 {dimension_numbers = #tpu.dot_dimension_numbers<[0], [0], [1], [1], [0, 1, 1, 1], [], []>} : vector<256x8xbf16>, vector<256x128xbf16>, vector<8x128xf32> -> vector<8x128xf32>
    %20 = arith.addf %18, %19 : vector<8x128xf32>
    %c0_10 = arith.constant 0 : index
    %c0_11 = arith.constant 0 : index
    %21 = vector.load %arg6[%c0_10, %c0_11] : memref<8x128xf32, #tpu.memory_space<vmem>>, vector<8x128xf32>
    tpu.vector_store %arg6[%c0_10, %c0_11], %20 {strides = array<i32>} : memref<8x128xf32, #tpu.memory_space<vmem>>, vector<8x128xf32>,
    return
  }
  func.func @transform_0(%arg0: i32, %arg1: i32, %arg2: memref<4xi32, #tpu.memory_space<smem>>) -> (i32, i32) {
    %c0_i32 = arith.constant 0 : i32
    %c0_i32_0 = arith.constant 0 : i32
    return %arg1, %c0_i32 : i32, i32
  }
  func.func @transform_1(%arg0: i32, %arg1: i32, %arg2: memref<4xi32, #tpu.memory_space<smem>>) -> (i32, i32) {
    %c0_i32 = arith.constant 0 : i32
    %c0_i32_0 = arith.constant 0 : i32
    return %arg1, %c0_i32 : i32, i32
  }
  func.func @transform_2(%arg0: i32, %arg1: i32, %arg2: memref<4xi32, #tpu.memory_space<smem>>) -> (i32, i32, i32) {
    %0 = arith.index_cast %arg1 : i32 to index
    %1 = memref.load %arg2[%0] : memref<4xi32, #tpu.memory_space<smem>>
    %c0_i32 = arith.constant 0 : i32
    %c0_i32_0 = arith.constant 0 : i32
    %c0_i32_1 = arith.constant 0 : i32
    return %1, %c0_i32, %c0_i32_0 : i32, i32, i32
  }
  func.func @transform_3(%arg0: i32, %arg1: i32, %arg2: memref<4xi32, #tpu.memory_space<smem>>) -> (i32, i32) {
    %c0_i32 = arith.constant 0 : i32
    %c0_i32_0 = arith.constant 0 : i32
    return %arg0, %c0_i32 : i32, i32
  }
}

</mosaic_0001>

<bundles_post_ra>
// kernel: tpu_custom_call.1
= control target key start
LH: loop header
LB: loop body
LE: loop exit
PB: predicated region body
PF: predicated region fallthrough
CT: control target
= control target key end

     0   :  { %s1488_s0 = inlined_call_operand.vmem [shape: s32[4], index: 0, kind: input, shape index: {}]   ;;  %s1489_s1 = inlined_call_operand.vmem [shape: s32[1024,1], index: 1, kind: input, shape index: {}]   ;;  %s1490_s2 = inlined_call_operand.vmem [shape: bf16[1024,16], index: 2, kind: input, shape index: {}]   ;;  %s1491_s3 = inlined_call_operand.vmem [shape: bf16[4,16,128], index: 3, kind: input, shape index: {}]   ;;  %s1492_s4 = inlined_call_operand.hbm [shape: f32[8,128], index: 4, kind: output, shape index: {}]  }
   0x1   :  { %s9_s17 = sshll.u32 %s1488_s0, 4  ;;  %s10_s17 = int_to_ptr.vmem [resolvable:$true] %s9_s17 }
   0x2   :  { %s1195_s18 = scalar_lea.vmem %s10_s17, 16  ;;  %p1200_p1 = scmp.lt.s32.totalorder %s10_s17, %s10_s17 }
   0x3   :  { %p1196_p0 = scmp.ne.s32.totalorder %s10_s17, %s1195_s18  ;;  %p1201_p2 = scmp.lt.s32.totalorder %s1195_s18, %s1195_s18 }
   0x5   :  { %p1202_p3 = por %p1201_p2, %p1200_p1 }
   0x7   :  { %p1203_p4 = pnand %p1202_p3, %p1196_p0 }
   0x9   :  { %1206 = shalt.err (!%p1203_p4)  }
   0xa   :  { %s1261_s19 = smov [#allocation3]  }
   0xb   :  { %12 = dma.vmem_to_smem %s10_s17, 16, %s1261_s19, [#allocation2] }
   0xc   :  { %1243 = dma.done.wait [#allocation2], 16 }
   0xd   :  { %1244 = vsyncadd [#allocation2], 4294967280 }
   0xe   :  { %14 = sfence }
   0xf   :  { %15 = vsyncpa [#allocation5], 0  ;;  %s1294_s20 = smov 0   ;;  %s1296_s21 = smov 0  }
  0x10   :  { %s1298_s22 = smov 0  }
  0x11 LB: > { %s987_s0 = sadd.s32 4294967295, %s1259_s22   ;;  %s30_s23 = sadd.s32 1, %s1255_s21  ;;  %s1259_s22 = sphi %s1298_s22, %s21_s22   ;;  %s1255_s21 = sphi %s1296_s21, %s1495_s21   ;;  %s1251_s20 = sphi %s1294_s20, %s1494_s20  }
  0x12   : > { %p31_p5 = scmp.ge.s32.totalorder %s30_s23, 4  ;;  %p990_p6 = scmp.ge.s32.totalorder %s1259_s22, 1 }
  0x13   : > { %p183_p7 = scmp.lt.s32.totalorder %s1259_s22, 5 }
  0x14   : > { %s1497_s23 = smov (%p31_p5, %s30_s23), 0 }
  0x15   : > { %p184_p8 = pnand %p990_p6, %p183_p7 }
  0x16   : > { %s991_s24 = sshll.u32 (!%p184_p8), %s1251_s20, 5  ;;  %s225_s25 = sld [smem:[#allocation3 + %s1251_s20]] (!%p184_p8) }
  0x17   : > { %187 = sbr.rel (%p184_p8) target bundleno = 536 (0x218), region = 32  ;;  %p214_p9 = scmp.lt.s32.totalorder (!%p184_p8), %s991_s24, 127 }
  0x18   : > { %p997_p11 = scmp.ne.s32.totalorder (!%p184_p8), %s1251_s20, 0 }
  0x1c   : > { %s1499_s24 = smov (!%p214_p9, %s991_s24), 127  ;;  %p226_p10 = scmp.lt.s32.totalorder %s225_s25, 3 }
  0x1d   : > { %s992_s26 = sshll.u32 %s1499_s24, 3  ;;  %s994_s27 = sshll.u32 %s1499_s24, 2 }
  0x1e   : > { %s1316_s30 = scalar_lea.vmem %s1489_s1, %s992_s26  ;;  %s1321_s7 = scalar_lea.vmem %s1490_s2, %s994_s27 }
  0x1f   : > { %s1501_s25 = smov (!%p226_p10, %s225_s25), 3  ;;  %236 = sbr.rel (%p997_p11) target bundleno = 38 (0x26), region = 36 }
  0x20   : > { %s1067_s8 = sshll.u32 %s1501_s25, 3 }
  0x21   : > { %s230_s11 = scalar_lea.vmem %s1491_s3, %s1067_s8 }
  0x24   : > { %v1262_v0 = vmov 0.0  }
  0x25   : > { %237 = vst [vmem:[#allocation4] sm:$0xff] %v1262_v0 }
  0x26 PF: > { %v605_v1 = vld [vmem:[%s1316_s30 + $0x80] sm:$0xff]  ;;  %v1263_v3 = vmov 0   ;;  %v606_v5 = vld [vmem:[%s1316_s30 + $0x88] sm:$0xff]  ;;  %vm358_vm0 = vcmask 130048   ;;  %v1181_v9 = vld [vmem:[%s1321_s7 + $0x10] sm:$0xff]   ;;  %v584_v51 = vlaneseq  ;;  %v1264_v55 = vmov 0.0  }
  0x27   : > { %v589_v2 = vld [vmem:[%s1316_s30] sm:$0xff]  ;;  %1177 = vset.pattern.permute.xlu1 %v1263_v3  ;;  %1176 = vset.pattern.permute.xlu0 %v1263_v3  ;;  %v590_v6 = vld [vmem:[%s1316_s30 + $0x8] sm:$0xff]  ;;  %v607_v10 = vld [vmem:[%s1316_s30 + $0x90] sm:$0xff]  ;;  %s1265_s12 = smov [#allocation4]   ;;  %p1464_p12 = scmp.eq.s32.totalorder %s987_s0, 3 }
  0x28   : > { %v1178_v4 = vld [vmem:[%s230_s11] sm:$0xff]   ;;  %670 = vperm.xlu0 %1176, %v605_v1   ;;  %622 = vperm.xlu1 %1177, %v589_v2   ;;  %v1180_v8 = vld [vmem:[%s1321_s7 + $0x8] sm:$0xff]   ;;  %v608_v11 = vld [vmem:[%s1316_s30 + $0x98] sm:$0xff]  ;;  %v1390_v52 = vand.u32 127, %v584_v51  ;;  %s913_s13 = sshll.u32 %s1265_s12, 4  ;;  %s914_s13 = int_to_ptr.vmem [resolvable:$true] %s913_s13 }
  0x29   : > { %1107 = vmatprep.subr.bf16.mxu0 %v1178_v4  ;;  %v1179_v7 = vld [vmem:[%s1321_s7] sm:$0xff]   ;;  %v591_v12 = vld [vmem:[%s1316_s30 + $0x10] sm:$0xff]  ;;  %v592_v13 = vld [vmem:[%s1316_s30 + $0x18] sm:$0xff]  ;;  %s1207_s15 = scalar_lea.vmem %s914_s13, 128  ;;  %p1214_p2 = scmp.lt.s32.totalorder %s914_s13, %s914_s13 }
  0x2a   : > { %1108 = vmatpush3.bf16.msra.mxu0 %v1178_v4  ;;  %1109 = vmatprep.mubr.msk.bf16.mxu0 %vm358_vm0, %v1179_v7  ;;  %v1182_v14 = vld [vmem:[%s1321_s7 + $0x18] sm:$0xff]   ;;  %v1183_v15 = vld [vmem:[%s1321_s7 + $0x20] sm:$0xff]   ;;  %v610_v17 = vld [vmem:[%s1316_s30 + $0xa8] sm:$0xff]  ;;  %p1208_p13 = scmp.ne.s32.totalorder %s914_s13, %s1207_s15  ;;  %p1215_p3 = scmp.lt.s32.totalorder %s1207_s15, %s1207_s15 }
  0x2b   : > { %v609_v16 = vld [vmem:[%s1316_s30 + $0xa0] sm:$0xff]  ;;  %v594_v19 = vld [vmem:[%s1316_s30 + $0x28] sm:$0xff]  ;;  %v1185_v21 = vld [vmem:[%s1321_s7 + $0x30] sm:$0xff]  }
  0x2c   : > { %673 = vperm.xlu0 %1176, %v606_v5   ;;  %625 = vperm.xlu1 %1177, %v590_v6   ;;  %v593_v18 = vld [vmem:[%s1316_s30 + $0x20] sm:$0xff]  ;;  %v1184_v20 = vld [vmem:[%s1321_s7 + $0x28] sm:$0xff]   ;;  %v611_v22 = vld [vmem:[%s1316_s30 + $0xb0] sm:$0xff]  ;;  %p1209_p0 = pnand %p1208_p13, %p1464_p12  ;;  %p1216_p4 = por %p1215_p3, %p1214_p2 }
  0x2d   : > { %1110 = vmatmul.mubr.msk.bf16.vlgmr.msra.gmra.mxu0 %vm358_vm0, %v1180_v8  ;;  %v612_v23 = vld [vmem:[%s1316_s30 + $0xb8] sm:$0xff]  ;;  %v595_v24 = vld [vmem:[%s1316_s30 + $0x30] sm:$0xff]  ;;  %v1187_v27 = vld [vmem:[%s1321_s7 + $0x40] sm:$0xff]  }
  0x2e   : > { %1113 = vmatprep.mubr.msk.bf16.mxu0 %vm358_vm0, %v1181_v9  ;;  %v596_v25 = vld [vmem:[%s1316_s30 + $0x38] sm:$0xff]  ;;  %v613_v28 = vld [vmem:[%s1316_s30 + $0xc0] sm:$0xff]  ;;  %v614_v29 = vld [vmem:[%s1316_s30 + $0xc8] sm:$0xff]  ;;  %p1210_p1 = pneg %p1209_p0 }
  0x2f   : > { %v1186_v26 = vld [vmem:[%s1321_s7 + $0x38] sm:$0xff]   ;;  %v597_v30 = vld [vmem:[%s1316_s30 + $0x40] sm:$0xff]  ;;  %v598_v31 = vld [vmem:[%s1316_s30 + $0x48] sm:$0xff] }
  0x30   : > { %676 = vperm.xlu0 %1176, %v607_v10   ;;  %679 = vperm.xlu1 %1177, %v608_v11   ;;  %v1188_v32 = vld [vmem:[%s1321_s7 + $0x48] sm:$0xff]   ;;  %v1189_v33 = vld [vmem:[%s1321_s7 + $0x50] sm:$0xff]   ;;  %v616_v35 = vld [vmem:[%s1316_s30 + $0xd8] sm:$0xff]  ;;  %p1217_p5 = pnand %p1216_p4, %p1210_p1 }
  0x31   : > { %v615_v34 = vld [vmem:[%s1316_s30 + $0xd0] sm:$0xff]  ;;  %v600_v37 = vld [vmem:[%s1316_s30 + $0x58] sm:$0xff]  ;;  %v1191_v39 = vld [vmem:[%s1321_s7 + $0x60] sm:$0xff]  }
  0x32   : > { %v599_v36 = vld [vmem:[%s1316_s30 + $0x50] sm:$0xff]  ;;  %v1190_v38 = vld [vmem:[%s1321_s7 + $0x58] sm:$0xff]   ;;  %v617_v40 = vld [vmem:[%s1316_s30 + $0xe0] sm:$0xff] }
  0x33   : > { %v618_v41 = vld [vmem:[%s1316_s30 + $0xe8] sm:$0xff]  ;;  %v601_v42 = vld [vmem:[%s1316_s30 + $0x60] sm:$0xff]  ;;  %v1193_v45 = vld [vmem:[%s1321_s7 + $0x70] sm:$0xff]  }
  0x34   : > { %628 = vperm.xlu0 %1176, %v591_v12   ;;  %631 = vperm.xlu1 %1177, %v592_v13   ;;  %v602_v43 = vld [vmem:[%s1316_s30 + $0x68] sm:$0xff]  ;;  %v619_v46 = vld [vmem:[%s1316_s30 + $0xf0] sm:$0xff]  ;;  %v620_v47 = vld [vmem:[%s1316_s30 + $0xf8] sm:$0xff] }
  0x35   : > { %1114 = vmatmul.mubr.msk.bf16.gmra.mxu0 %vm358_vm0, %v1182_v14  ;;  %v1192_v44 = vld [vmem:[%s1321_s7 + $0x68] sm:$0xff]   ;;  %v603_v48 = vld [vmem:[%s1316_s30 + $0x70] sm:$0xff]  ;;  %v604_v49 = vld [vmem:[%s1316_s30 + $0x78] sm:$0xff] }
  0x36   : > { %1117 = vmatprep.mubr.msk.bf16.mxu0 %vm358_vm0, %v1183_v15  ;;  %v1194_v50 = vld [vmem:[%s1321_s7 + $0x78] sm:$0xff]  }
  0x38   : > { %682 = vperm.xlu0 %1176, %v609_v16   ;;  %685 = vperm.xlu1 %1177, %v610_v17  }
  0x3c   : > { %634 = vperm.xlu0 %1176, %v593_v18   ;;  %637 = vperm.xlu1 %1177, %v594_v19  }
  0x3d   : > { %1118 = vmatmul.mubr.msk.bf16.gmra.mxu0 %vm358_vm0, %v1184_v20 }
  0x3e   : > { %1121 = vmatprep.mubr.msk.bf16.mxu0 %vm358_vm0, %v1185_v21 }
  0x40   : > { %688 = vperm.xlu0 %1176, %v611_v22   ;;  %691 = vperm.xlu1 %1177, %v612_v23  }
  0x44   : > { %640 = vperm.xlu0 %1176, %v595_v24   ;;  %643 = vperm.xlu1 %1177, %v596_v25  }
  0x45   : > { %1122 = vmatmul.mubr.msk.bf16.gmra.mxu0 %vm358_vm0, %v1186_v26 }
  0x46   : > { %1125 = vmatprep.mubr.msk.bf16.mxu0 %vm358_vm0, %v1187_v27 }
  0x48   : > { %694 = vperm.xlu0 %1176, %v613_v28   ;;  %697 = vperm.xlu1 %1177, %v614_v29  }
  0x4c   : > { %646 = vperm.xlu0 %1176, %v597_v30   ;;  %649 = vperm.xlu1 %1177, %v598_v31  }
  0x4d   : > { %1126 = vmatmul.mubr.msk.bf16.gmra.mxu0 %vm358_vm0, %v1188_v32 }
  0x4e   : > { %1129 = vmatprep.mubr.msk.bf16.mxu0 %vm358_vm0, %v1189_v33 }
  0x50   : > { %700 = vperm.xlu0 %1176, %v615_v34   ;;  %703 = vperm.xlu1 %1177, %v616_v35  }
  0x54   : > { %652 = vperm.xlu0 %1176, %v599_v36   ;;  %655 = vperm.xlu1 %1177, %v600_v37  }
  0x55   : > { %1130 = vmatmul.mubr.msk.bf16.gmra.mxu0 %vm358_vm0, %v1190_v38 }
  0x56   : > { %1133 = vmatprep.mubr.msk.bf16.mxu0 %vm358_vm0, %v1191_v39 }
  0x58   : > { %706 = vperm.xlu0 %1176, %v617_v40   ;;  %709 = vperm.xlu1 %1177, %v618_v41  }
  0x5c   : > { %658 = vperm.xlu0 %1176, %v601_v42   ;;  %661 = vperm.xlu1 %1177, %v602_v43  }
  0x5d   : > { %1134 = vmatmul.mubr.msk.bf16.gmra.mxu0 %vm358_vm0, %v1192_v44 }
  0x5e   : > { %1137 = vmatprep.mubr.msk.bf16.mxu0 %vm358_vm0, %v1193_v45 }
  0x60   : > { %712 = vperm.xlu0 %1176, %v619_v46   ;;  %715 = vperm.xlu1 %1177, %v620_v47  }
  0x64   : > { %664 = vperm.xlu0 %1176, %v603_v48   ;;  %667 = vperm.xlu1 %1177, %v604_v49  }
  0x65   : > { %1138 = vmatmul.mubr.msk.bf16.gmra.mxu0 %vm358_vm0, %v1194_v50 }
  0xa3   : > { %v671_v53 = vpop.permute.xlu0 %670  ;;  %v623_v54 = vpop.permute.xlu1 %622 }
  0xa4   : > { %vm733_vm1 = vcmp.eq.s32.totalorder %v671_v53, %v1390_v52  ;;  %vm717_vm2 = vcmp.eq.s32.totalorder %v623_v54, %v1390_v52 }
  0xa5   : > { %v1047_v56 = vsel %vm733_vm1, 1.0, %v1264_v55  ;;  %v1031_v57 = vsel %vm717_vm2, 1.0, %v1264_v55 }
  0xa7   : > { %v674_v58 = vpop.permute.xlu0 %673  ;;  %v626_v59 = vpop.permute.xlu1 %625 }
  0xa8   : > { %vm734_vm3 = vcmp.eq.s32.totalorder %v674_v58, %v1390_v52  ;;  %vm718_vm4 = vcmp.eq.s32.totalorder %v626_v59, %v1390_v52 }
  0xa9   : > { %v1048_v60 = vsel %vm734_vm3, 1.0, %v1264_v55  ;;  %v1032_v61 = vsel %vm718_vm4, 1.0, %v1264_v55 }
  0xaa   : > { %v821_v62 = vpack.c.bf16 %v1048_v60, %v1047_v56  ;;  %v813_v63 = vpack.c.bf16 %v1032_v61, %v1031_v57 }
  0xab   : > { %v677_v0 = vpop.permute.xlu0 %676  ;;  %v680_v1 = vpop.permute.xlu1 %679 }
  0xac   : > { %vm735_vm5 = vcmp.eq.s32.totalorder %v677_v0, %v1390_v52  ;;  %vm736_vm6 = vcmp.eq.s32.totalorder %v680_v1, %v1390_v52  ;;  %846 = vxpose.xlu0.c.b16.start [1/8] (narrow) %v821_v62, 16  ;;  %830 = vxpose.xlu1.c.b16.start [1/8] (narrow) %v813_v63, 16 }
  0xad   : > { %v1049_v2 = vsel %vm735_vm5, 1.0, %v1264_v55  ;;  %v1050_v3 = vsel %vm736_vm6, 1.0, %v1264_v55 }
  0xae   : > { %v822_v4 = vpack.c.bf16 %v1050_v3, %v1049_v2 }
  0xaf   : > { %v629_v5 = vpop.permute.xlu0 %628  ;;  %v632_v6 = vpop.permute.xlu1 %631 }
  0xb0   : > { %vm719_vm7 = vcmp.eq.s32.totalorder %v629_v5, %v1390_v52  ;;  %vm720_vm8 = vcmp.eq.s32.totalorder %v632_v6, %v1390_v52  ;;  %847 = vxpose.xlu0.c.b16.cont [2/8] (narrow) %v822_v4, 16 }
  0xb1   : > { %v1033_v7 = vsel %vm719_vm7, 1.0, %v1264_v55  ;;  %v1034_v8 = vsel %vm720_vm8, 1.0, %v1264_v55 }
  0xb2   : > { %v814_v9 = vpack.c.bf16 %v1034_v8, %v1033_v7 }
  0xb3   : > { %v683_v10 = vpop.permute.xlu0 %682  ;;  %v686_v11 = vpop.permute.xlu1 %685 }
  0xb4   : > { %vm737_vm9 = vcmp.eq.s32.totalorder %v683_v10, %v1390_v52  ;;  %vm738_vm10 = vcmp.eq.s32.totalorder %v686_v11, %v1390_v52  ;;  %831 = vxpose.xlu1.c.b16.cont [2/8] (narrow) %v814_v9, 16 }
  0xb5   : > { %v1051_v12 = vsel %vm737_vm9, 1.0, %v1264_v55  ;;  %v1052_v13 = vsel %vm738_vm10, 1.0, %v1264_v55 }
  0xb6   : > { %v823_v14 = vpack.c.bf16 %v1052_v13, %v1051_v12 }
  0xb7   : > { %v635_v15 = vpop.permute.xlu0 %634  ;;  %v638_v16 = vpop.permute.xlu1 %637 }
  0xb8   : > { %vm721_vm11 = vcmp.eq.s32.totalorder %v635_v15, %v1390_v52  ;;  %vm722_vm12 = vcmp.eq.s32.totalorder %v638_v16, %v1390_v52  ;;  %848 = vxpose.xlu0.c.b16.cont [3/8] (narrow) %v823_v14, 16 }
  0xb9   : > { %v1035_v17 = vsel %vm721_vm11, 1.0, %v1264_v55  ;;  %v1036_v18 = vsel %vm722_vm12, 1.0, %v1264_v55 }
  0xba   : > { %v815_v19 = vpack.c.bf16 %v1036_v18, %v1035_v17 }
  0xbb   : > { %v689_v20 = vpop.permute.xlu0 %688  ;;  %v692_v21 = vpop.permute.xlu1 %691 }
  0xbc   : > { %vm739_vm13 = vcmp.eq.s32.totalorder %v689_v20, %v1390_v52  ;;  %vm740_vm14 = vcmp.eq.s32.totalorder %v692_v21, %v1390_v52  ;;  %832 = vxpose.xlu1.c.b16.cont [3/8] (narrow) %v815_v19, 16 }
  0xbd   : > { %v1053_v22 = vsel %vm739_vm13, 1.0, %v1264_v55  ;;  %v1054_v23 = vsel %vm740_vm14, 1.0, %v1264_v55 }
  0xbe   : > { %v824_v24 = vpack.c.bf16 %v1054_v23, %v1053_v22 }
  0xbf   : > { %v641_v25 = vpop.permute.xlu0 %640  ;;  %v644_v26 = vpop.permute.xlu1 %643 }
  0xc0   : > { %vm723_vm15 = vcmp.eq.s32.totalorder %v641_v25, %v1390_v52  ;;  %vm724_vm0 = vcmp.eq.s32.totalorder %v644_v26, %v1390_v52  ;;  %849 = vxpose.xlu0.c.b16.cont [4/8] (narrow) %v824_v24, 16 }
  0xc1   : > { %v1037_v27 = vsel %vm723_vm15, 1.0, %v1264_v55  ;;  %v1038_v28 = vsel %vm724_vm0, 1.0, %v1264_v55 }
  0xc2   : > { %v816_v29 = vpack.c.bf16 %v1038_v28, %v1037_v27 }
  0xc3   : > { %v695_v30 = vpop.permute.xlu0 %694  ;;  %v698_v31 = vpop.permute.xlu1 %697 }
  0xc4   : > { %vm741_vm1 = vcmp.eq.s32.totalorder %v695_v30, %v1390_v52  ;;  %vm742_vm2 = vcmp.eq.s32.totalorder %v698_v31, %v1390_v52  ;;  %833 = vxpose.xlu1.c.b16.cont [4/8] (narrow) %v816_v29, 16 }
  0xc5   : > { %v1055_v32 = vsel %vm741_vm1, 1.0, %v1264_v55  ;;  %v1056_v33 = vsel %vm742_vm2, 1.0, %v1264_v55 }
  0xc6   : > { %v825_v34 = vpack.c.bf16 %v1056_v33, %v1055_v32 }
  0xc7   : > { %v647_v35 = vpop.permute.xlu0 %646  ;;  %v650_v36 = vpop.permute.xlu1 %649 }
  0xc8   : > { %vm725_vm3 = vcmp.eq.s32.totalorder %v647_v35, %v1390_v52  ;;  %vm726_vm4 = vcmp.eq.s32.totalorder %v650_v36, %v1390_v52  ;;  %850 = vxpose.xlu0.c.b16.cont [5/8] (narrow) %v825_v34, 16 }
  0xc9   : > { %v1039_v37 = vsel %vm725_vm3, 1.0, %v1264_v55  ;;  %v1040_v38 = vsel %vm726_vm4, 1.0, %v1264_v55 }
  0xca   : > { %v817_v39 = vpack.c.bf16 %v1040_v38, %v1039_v37 }
  0xcb   : > { %v701_v40 = vpop.permute.xlu0 %700  ;;  %v704_v41 = vpop.permute.xlu1 %703 }
  0xcc   : > { %vm743_vm5 = vcmp.eq.s32.totalorder %v701_v40, %v1390_v52  ;;  %vm744_vm6 = vcmp.eq.s32.totalorder %v704_v41, %v1390_v52  ;;  %834 = vxpose.xlu1.c.b16.cont [5/8] (narrow) %v817_v39, 16 }
  0xcd   : > { %v1057_v42 = vsel %vm743_vm5, 1.0, %v1264_v55  ;;  %v1058_v43 = vsel %vm744_vm6, 1.0, %v1264_v55 }
  0xce   : > { %v826_v44 = vpack.c.bf16 %v1058_v43, %v1057_v42 }
  0xcf   : > { %v653_v45 = vpop.permute.xlu0 %652  ;;  %v656_v46 = vpop.permute.xlu1 %655 }
  0xd0   : > { %vm727_vm7 = vcmp.eq.s32.totalorder %v653_v45, %v1390_v52  ;;  %vm728_vm8 = vcmp.eq.s32.totalorder %v656_v46, %v1390_v52  ;;  %851 = vxpose.xlu0.c.b16.cont [6/8] (narrow) %v826_v44, 16 }
  0xd1   : > { %v1041_v47 = vsel %vm727_vm7, 1.0, %v1264_v55  ;;  %v1042_v48 = vsel %vm728_vm8, 1.0, %v1264_v55 }
  0xd2   : > { %v818_v49 = vpack.c.bf16 %v1042_v48, %v1041_v47 }
  0xd3   : > { %v707_v50 = vpop.permute.xlu0 %706  ;;  %v710_v51 = vpop.permute.xlu1 %709 }
  0xd4   : > { %vm745_vm9 = vcmp.eq.s32.totalorder %v707_v50, %v1390_v52  ;;  %vm746_vm10 = vcmp.eq.s32.totalorder %v710_v51, %v1390_v52  ;;  %835 = vxpose.xlu1.c.b16.cont [6/8] (narrow) %v818_v49, 16 }
  0xd5   : > { %v1059_v53 = vsel %vm745_vm9, 1.0, %v1264_v55  ;;  %v1060_v54 = vsel %vm746_vm10, 1.0, %v1264_v55 }
  0xd6   : > { %v827_v56 = vpack.c.bf16 %v1060_v54, %v1059_v53 }
  0xd7   : > { %v659_v57 = vpop.permute.xlu0 %658  ;;  %v662_v58 = vpop.permute.xlu1 %661 }
  0xd8   : > { %vm729_vm11 = vcmp.eq.s32.totalorder %v659_v57, %v1390_v52  ;;  %vm730_vm12 = vcmp.eq.s32.totalorder %v662_v58, %v1390_v52  ;;  %852 = vxpose.xlu0.c.b16.cont [7/8] (narrow) %v827_v56, 16 }
  0xd9   : > { %v1043_v59 = vsel %vm729_vm11, 1.0, %v1264_v55  ;;  %v1044_v60 = vsel %vm730_vm12, 1.0, %v1264_v55 }
  0xda   : > { %v819_v61 = vpack.c.bf16 %v1044_v60, %v1043_v59  ;;  %v829_v59 = vld [vmem:[#allocation4] sm:$0xff] }
  0xdb   : > { %v713_v62 = vpop.permute.xlu0 %712  ;;  %v716_v63 = vpop.permute.xlu1 %715 }
  0xdc   : > { %vm747_vm13 = vcmp.eq.s32.totalorder %v713_v62, %v1390_v52  ;;  %vm748_vm14 = vcmp.eq.s32.totalorder %v716_v63, %v1390_v52  ;;  %836 = vxpose.xlu1.c.b16.cont [7/8] (narrow) %v819_v61, 16 }
  0xdd   : > { %v1061_v0 = vsel %vm747_vm13, 1.0, %v1264_v55  ;;  %v1062_v1 = vsel %vm748_vm14, 1.0, %v1264_v55 }
  0xde   : > { %v828_v2 = vpack.c.bf16 %v1062_v1, %v1061_v0 }
  0xdf   : > { %v665_v3 = vpop.permute.xlu0 %664  ;;  %v668_v4 = vpop.permute.xlu1 %667 }
  0xe0   : > { %vm731_vm15 = vcmp.eq.s32.totalorder %v665_v3, %v1390_v52  ;;  %vm732_vm0 = vcmp.eq.s32.totalorder %v668_v4, %v1390_v52  ;;  %853 = vxpose.xlu0.c.b16.end [8/8] (narrow) %v828_v2, 16 }
  0xe1   : > { %v1045_v5 = vsel %vm731_vm15, 1.0, %v1264_v55  ;;  %v1046_v6 = vsel %vm732_vm0, 1.0, %v1264_v55 }
  0xe2   : > { %v820_v7 = vpack.c.bf16 %v1046_v6, %v1045_v5 }
  0xe4   : > { %837 = vxpose.xlu1.c.b16.end [8/8] (narrow) %v820_v7, 16 }
  0xed   : > { %v1456_v8 = vpop.f32.mrf.mxu0 }
  0xef   : > { %v1458_v9 = vpop.f32.mrf.mxu0 }
  0xf1   : > { %v1112_v10 = vpop.f32.mrf.mxu0 }
  0xf2   : > { %v569_v11 = vpack.c.bf16 %v1112_v10, %v1456_v8 }
  0xf3   : > { %v444_v12 = vpop.f32.mrf.mxu0 }
  0xf4   : > { %v568_v13 = vpack.c.bf16 %v444_v12, %v1458_v9 }
  0xf5   : > { %v1115_v14 = vpop.f32.mrf.mxu0 }
  0xf7   : > { %v457_v15 = vpop.f32.mrf.mxu0 }
  0xf9   : > { %v1116_v52 = vpop.f32.mrf.mxu0 }
  0xfa   : > { %v571_v16 = vpack.c.bf16 %v1116_v52, %v1115_v14 }
  0xfb   : > { %v460_v17 = vpop.f32.mrf.mxu0 }
  0xfc   : > { %v570_v18 = vpack.c.bf16 %v460_v17, %v457_v15 }
  0xfd   : > { %v1119_v19 = vpop.f32.mrf.mxu0 }
  0xff   : > { %v473_v55 = vpop.f32.mrf.mxu0 }
 0x101   : > { %v1120_v20 = vpop.f32.mrf.mxu0 }
 0x102   : > { %v573_v48 = vpack.c.bf16 %v1120_v20, %v1119_v19 }
 0x103   : > { %v476_v21 = vpop.f32.mrf.mxu0 }
 0x104   : > { %v572_v50 = vpack.c.bf16 %v476_v21, %v473_v55 }
 0x105   : > { %v1123_v22 = vpop.f32.mrf.mxu0 }
 0x107   : > { %v489_v23 = vpop.f32.mrf.mxu0 }
 0x109   : > { %v1124_v24 = vpop.f32.mrf.mxu0 }
 0x10a   : > { %v575_v43 = vpack.c.bf16 %v1124_v24, %v1123_v22 }
 0x10b   : > { %v492_v25 = vpop.f32.mrf.mxu0 }
 0x10c   : > { %v574_v46 = vpack.c.bf16 %v492_v25, %v489_v23 }
 0x10d   : > { %v1127_v26 = vpop.f32.mrf.mxu0 }
 0x10f   : > { %v505_v27 = vpop.f32.mrf.mxu0 }
 0x111   : > { %v1128_v28 = vpop.f32.mrf.mxu0 }
 0x112   : > { %v577_v54 = vpack.c.bf16 %v1128_v28, %v1127_v26 }
 0x113   : > { %v508_v29 = vpop.f32.mrf.mxu0 }
 0x114   : > { %v576_v56 = vpack.c.bf16 %v508_v29, %v505_v27 }
 0x115   : > { %v1131_v30 = vpop.f32.mrf.mxu0 }
 0x117   : > { %v521_v31 = vpop.f32.mrf.mxu0 }
 0x119   : > { %v1132_v32 = vpop.f32.mrf.mxu0 }
 0x11a   : > { %v579_v51 = vpack.c.bf16 %v1132_v32, %v1131_v30 }
 0x11b   : > { %v524_v33 = vpop.f32.mrf.mxu0 }
 0x11c   : > { %v578_v53 = vpack.c.bf16 %v524_v33, %v521_v31 }
 0x11d   : > { %v1135_v34 = vpop.f32.mrf.mxu0 }
 0x11f   : > { %v537_v35 = vpop.f32.mrf.mxu0 }
 0x121   : > { %v1136_v36 = vpop.f32.mrf.mxu0 }
 0x122   : > { %v581_v47 = vpack.c.bf16 %v1136_v36, %v1135_v34 }
 0x123   : > { %v540_v37 = vpop.f32.mrf.mxu0 }
 0x124   : > { %v580_v49 = vpack.c.bf16 %v540_v37, %v537_v35 }
 0x125   : > { %v1139_v38 = vpop.f32.mrf.mxu0 }
 0x126   : > { %v854_v39 = vpop.trf.xlu0 }
 0x127   : > { %v553_v40 = vpop.f32.mrf.mxu0  ;;  %894 = vmatprep.mubr.bf16.mxu1 %v854_v39 }
 0x129   : > { %v1140_v41 = vpop.f32.mrf.mxu0 }
 0x12a   : > { %v583_v42 = vpack.c.bf16 %v1140_v41, %v1139_v38  ;;  %v838_v57 = vpop.trf.xlu1 }
 0x12b   : > { %v556_v44 = vpop.f32.mrf.mxu0 }
 0x12c   : > { %v582_v45 = vpack.c.bf16 %v556_v44, %v553_v40  ;;  %1085 = vmatprep.subr.bf16.mxu1 %v583_v42 }
 0x12d   : > { %1086 = vmatpush3.bf16.msra.mxu1 %v575_v43 }
 0x12e   : > { %1087 = vmatprep.subr.bf16.mxu1 %v582_v45 }
 0x131   : > { %1088 = vmatpush3.bf16.msra.mxu1 %v574_v46 }
 0x132   : > { %1089 = vmatprep.subr.bf16.mxu1 %v581_v47 }
 0x135   : > { %1090 = vmatpush3.bf16.msra.mxu1 %v573_v48 }
 0x136   : > { %1091 = vmatprep.subr.bf16.mxu1 %v580_v49 }
 0x139   : > { %1092 = vmatpush3.bf16.msra.mxu1 %v572_v50 }
 0x13a   : > { %1093 = vmatprep.subr.bf16.mxu1 %v579_v51 }
 0x13d   : > { %1094 = vmatpush3.bf16.msra.mxu1 %v571_v16 }
 0x13e   : > { %1095 = vmatprep.subr.bf16.mxu1 %v578_v53 }
 0x141   : > { %1096 = vmatpush3.bf16.msra.mxu1 %v570_v18 }
 0x142   : > { %1097 = vmatprep.subr.bf16.mxu1 %v577_v54 }
 0x145   : > { %1098 = vmatpush3.bf16.msra.mxu1 %v569_v11 }
 0x146   : > { %1099 = vmatprep.subr.bf16.mxu1 %v576_v56 }
 0x149   : > { %1100 = vmatpush3.bf16.msra.mxu1 %v568_v13 }
 0x14c   : > { %895 = vmatmul.mubr.bf16.vlgmr.msra.gmra.mxu1 %v838_v57 }
 0x20c   : > { %v1101_v58 = vpop.f32.mrf.mxu1 }
 0x20e   : > { %v1102_v60 = vpop.f32.mrf.mxu1 }
 0x20f   : > { %v1103_v61 = vadd.f32 %v1102_v60, %v1101_v58 }
 0x210   : > { %v1104_v62 = vpop.f32.mrf.mxu1 }
 0x211   : > { %v902_v63 = vadd.f32 %v1103_v61, %v829_v59 }
 0x212   : > { %v1105_v0 = vpop.f32.mrf.mxu1 }
 0x213   : > { %903 = vst [vmem:[#allocation4] sm:$0xff] %v902_v63 }
 0x214   : > { %1220 = shalt.err (!%p1217_p5)
}
 0x215   : > { %1142 = dma.vmem_to_hbm [thread:$0]  (%p1464_p12), %s914_s13, 128, %s1492_s4, [#allocation5]  }
 0x216   : > { %1246 = dma.done.wait (%p1464_p12), [#allocation5], 128  }
 0x217   : > { %1248 = vsyncadd (%p1464_p12), [#allocation5], 4294967168 }
 0x218 PF: > { %s21_s22 = sadd.s32 1, %s1259_s22   ;;  %s1494_s20 = smov %s1255_s21 }
 0x219   : > { %p18_p6 = scmp.ge.s32.totalorder %s21_s22, 6   ;;  %s1495_s21 = smov %s1497_s23 }
 0x21b   :  { %20 = sbr.rel (!%p18_p6) target bundleno = 17 (0x11), region = 70 }
 0x220   :  { %926 = vsyncpa [#allocation5], 1 }
 0x221   :  { %928 = vsyncpa [#allocation5 + $0x1], 1 }

</bundles_post_ra>
